<compile_context>
chip_gen: v6e
topology: v6e:2x2x1
jax: 0.10.0
libtpu: 0.0.40
codegen_flags: <defaults>
</compile_context>

<pallas_src>
import math
from functools import partial

import jax
import jax.numpy as jnp
from jax.experimental import pallas as pl
from jax.experimental.pallas import tpu as pltpu


_MAX_LANES = 1024                      # preferred lane-dense minor dim
_TARGET_BLOCK_BYTES = 4 * 1024 * 1024  # ~4 MiB per buffer per grid step
_VMEM_LIMIT_BYTES = 48 * 1024 * 1024   # < 64 MiB v7x physical; << v5e/v6e 128 MiB


def _fadein_kernel(alpha_ref, x0_ref, x1_ref, o_ref):
    # alpha lives in SMEM as a (1,) f32 scalar.
    a = alpha_ref[0]
    x0 = x0_ref[...].astype(jnp.float32)
    x1 = x1_ref[...].astype(jnp.float32)
    o_ref[...] = (x0 * (1.0 - a) + x1 * a).astype(o_ref.dtype)


def _pick_lanes(total):
    """Largest lane width in {1024,512,256,128} dividing total, else None."""
    lanes = _MAX_LANES
    while lanes >= 128:
        if total % lanes == 0:
            return lanes
        lanes //= 2
    return None


def _blend_2d(x0_2d, x1_2d, alpha_arr):
    """Tiled, pipelined blend over a lane-dense (rows, lanes) layout."""
    rows, lanes = x0_2d.shape
    dtype = x0_2d.dtype
    itemsize = jnp.dtype(dtype).itemsize
    # Sublane packing multiple: 8 for f32, 16 for bf16/f16, 32 for 8-bit types.
    sublane = max(8, 32 // itemsize)

    # Byte-based tile sizing: ~4 MiB per buffer, a multiple of `sublane` rows.
    max_rows = max(sublane,
                   (_TARGET_BLOCK_BYTES // (lanes * itemsize)) // sublane * sublane)

    if rows <= sublane:
        # Tiny array: single full-array block (block dims == array dims is legal).
        block_rows = rows
    else:
        # Guarantee >= 2 grid steps so both v7x TensorCores participate and the
        # DMA/compute pipeline has overlap; cap at the ~4 MiB byte budget.
        half = pl.cdiv(rows, 2)
        half_up = pl.cdiv(half, sublane) * sublane
        block_rows = min(max_rows, half_up)

    grid = (pl.cdiv(rows, block_rows),)
    n_elems = rows * lanes
    cost = pl.CostEstimate(
        flops=2 * n_elems,
        transcendentals=0,
        bytes_accessed=3 * n_elems * itemsize,
    )

    return pl.pallas_call(
        _fadein_kernel,
        out_shape=jax.ShapeDtypeStruct((rows, lanes), dtype),
        grid=grid,
        in_specs=[
            pl.BlockSpec(memory_space=pltpu.MemorySpace.SMEM),      # alpha (1,)
            pl.BlockSpec((block_rows, lanes), lambda i: (i, 0)),    # x0 tile
            pl.BlockSpec((block_rows, lanes), lambda i: (i, 0)),    # x1 tile
        ],
        out_specs=pl.BlockSpec((block_rows, lanes), lambda i: (i, 0)),
        compiler_params=pltpu.CompilerParams(
            dimension_semantics=("parallel",),   # split row tiles across TCs
            vmem_limit_bytes=_VMEM_LIMIT_BYTES,
        ),
        cost_estimate=cost,
    )(alpha_arr, x0_2d, x1_2d)


@jax.jit
def _fadein_jit(x0, x1, alpha_arr):
    orig_shape = x0.shape
    total = math.prod(orig_shape) if orig_shape else 1

    lanes = _pick_lanes(total)
    if lanes is not None:
        # Fast path: pure metadata reshape to a lane-dense 2D view, no copies.
        x0_2d = jnp.reshape(x0, (-1, lanes))
        x1_2d = jnp.reshape(x1, (-1, lanes))
        out_2d = _blend_2d(x0_2d, x1_2d, alpha_arr)
        return jnp.reshape(out_2d, orig_shape)

    # Rare fallback: total not divisible by 128 — pad to the next lane multiple.
    # TODO(synk): could avoid the pad copy with a ragged 1D final tile, but this
    # path only triggers for non-128-divisible element counts (tiny tensors).
    lanes = 128
    padded = pl.cdiv(total, lanes) * lanes
    x0f = jnp.pad(jnp.reshape(x0, (-1,)), (0, padded - total))
    x1f = jnp.pad(jnp.reshape(x1, (-1,)), (0, padded - total))
    out_2d = _blend_2d(jnp.reshape(x0f, (-1, lanes)),
                       jnp.reshape(x1f, (-1, lanes)), alpha_arr)
    return jnp.reshape(jnp.reshape(out_2d, (-1,))[:total], orig_shape)


def fadein(x0, x1, alpha):
    """out = x0 * (1 - alpha) + x1 * alpha (PyTorch fadein_layer.forward)."""
    assert x0.shape == x1.shape, (x0.shape, x1.shape)
    assert x0.dtype == x1.dtype, (x0.dtype, x1.dtype)
    alpha_arr = jnp.asarray([alpha], dtype=jnp.float32)
    return _fadein_jit(x0, x1, alpha_arr)


class FadeinLayer:
    """JAX/Pallas equivalent of the PyTorch fadein_layer module."""

    def __init__(self, config=None):
        self.alpha = 0.0

    def update_alpha(self, delta):
        self.alpha = max(0.0, min(self.alpha + delta, 1.0))

    def set_alpha(self, value):
        self.alpha = max(0.0, min(value, 1.0))

    def __call__(self, x):
        # x is a pair (low-res branch output, high-res branch output),
        # exactly as in the torch module's forward(x): x[0], x[1].
        return fadein(x[0], x[1], self.alpha)


if __name__ == "__main__":
    key = jax.random.PRNGKey(0)
    k0, k1, k2, k3 = jax.random.split(key, 4)

    # Main check: small NCHW activations, as fed to fadein in PGGAN.
    shape = (2, 4, 16, 16)
    x0 = jax.random.normal(k0, shape, dtype=jnp.float32)
    x1 = jax.random.normal(k1, shape, dtype=jnp.float32)

    layer = FadeinLayer(config=None)
    layer.set_alpha(0.3)

    y = jax.block_until_ready(layer((x0, x1)))
    ref = x0 * (1.0 - 0.3) + x1 * 0.3
    assert y.shape == shape, y.shape
    assert y.dtype == x0.dtype, y.dtype
    assert bool(jnp.allclose(y, ref, atol=1e-6, rtol=1e-6)), float(
        jnp.max(jnp.abs(y - ref)))

    # Alpha extremes: pure x0 / pure x1 (reuses the same jit trace).
    layer.set_alpha(0.0)
    y0 = jax.block_until_ready(layer((x0, x1)))
    assert bool(jnp.allclose(y0, x0, atol=1e-6))
    layer.set_alpha(1.0)
    y1 = jax.block_until_ready(layer((x0, x1)))
    assert bool(jnp.allclose(y1, x1, atol=1e-6))

    # Odd total (not divisible by 128) exercises the padded fallback path.
    shape_odd = (2, 3, 5, 7)
    a0 = jax.random.normal(k2, shape_odd, dtype=jnp.float32)
    a1 = jax.random.normal(k3, shape_odd, dtype=jnp.float32)
    layer.set_alpha(0.75)
    yo = jax.block_until_ready(layer((a0, a1)))
    refo = a0 * 0.25 + a1 * 0.75
    assert yo.shape == shape_odd, yo.shape
    assert bool(jnp.allclose(yo, refo, atol=1e-6, rtol=1e-6)), float(
        jnp.max(jnp.abs(yo - refo)))

    print("KERNEL_OK")
</pallas_src>

<mosaic_0001>
module attributes {stable_mosaic.version = 11 : i64} {
  func.func @_fadein_kernel(%arg0: i32, %arg1: memref<1xf32, #tpu.memory_space<smem>>, %arg2: memref<2x1024xf32, #tpu.memory_space<vmem>>, %arg3: memref<2x1024xf32, #tpu.memory_space<vmem>>, %arg4: memref<2x1024xf32, #tpu.memory_space<vmem>>) attributes {dimension_semantics = [#tpu.dimension_semantics<parallel>], iteration_bounds = array<i64: 1>, scalar_prefetch = 0 : i64, scratch_operands = 0 : i64, tpu.core_type = #tpu.core_type<tc>, window_params = [{transform_indices = @transform_0, window_bounds = array<i64: 1>}, {transform_indices = @transform_1, window_bounds = array<i64: 2, 1024>}, {transform_indices = @transform_2, window_bounds = array<i64: 2, 1024>}, {transform_indices = @transform_3, window_bounds = array<i64: 2, 1024>}]} {
    %c0 = arith.constant 0 : index
    %0 = memref.load %arg1[%c0] : memref<1xf32, #tpu.memory_space<smem>>
    %c0_0 = arith.constant 0 : index
    %c0_1 = arith.constant 0 : index
    %1 = vector.load %arg2[%c0_0, %c0_1] : memref<2x1024xf32, #tpu.memory_space<vmem>>, vector<2x1024xf32>
    %c0_2 = arith.constant 0 : index
    %c0_3 = arith.constant 0 : index
    %2 = vector.load %arg3[%c0_2, %c0_3] : memref<2x1024xf32, #tpu.memory_space<vmem>>, vector<2x1024xf32>
    %cst = arith.constant 1.000000e+00 : f32
    %3 = arith.subf %cst, %0 : f32
    %4 = vector.broadcast %3 : f32 to vector<2x1024xf32>
    %5 = arith.mulf %1, %4 : vector<2x1024xf32>
    %6 = vector.broadcast %0 : f32 to vector<2x1024xf32>
    %7 = arith.mulf %2, %6 : vector<2x1024xf32>
    %8 = arith.addf %5, %7 : vector<2x1024xf32>
    %c0_4 = arith.constant 0 : index
    %c0_5 = arith.constant 0 : index
    %9 = vector.load %arg4[%c0_4, %c0_5] : memref<2x1024xf32, #tpu.memory_space<vmem>>, vector<2x1024xf32>
    tpu.vector_store %arg4[%c0_4, %c0_5], %8 {strides = array<i32>} : memref<2x1024xf32, #tpu.memory_space<vmem>>, vector<2x1024xf32>,
    return
  }
  func.func @transform_0(%arg0: i32) -> i32 {
    %c0_i32 = arith.constant 0 : i32
    %c0_i32_0 = arith.constant 0 : i32
    return %c0_i32 : i32
  }
  func.func @transform_1(%arg0: i32) -> (i32, i32) {
    %c0_i32 = arith.constant 0 : i32
    %c0_i32_0 = arith.constant 0 : i32
    return %arg0, %c0_i32 : i32, i32
  }
  func.func @transform_2(%arg0: i32) -> (i32, i32) {
    %c0_i32 = arith.constant 0 : i32
    %c0_i32_0 = arith.constant 0 : i32
    return %arg0, %c0_i32 : i32, i32
  }
  func.func @transform_3(%arg0: i32) -> (i32, i32) {
    %c0_i32 = arith.constant 0 : i32
    %c0_i32_0 = arith.constant 0 : i32
    return %arg0, %c0_i32 : i32, i32
  }
}

</mosaic_0001>

<bundles_post_ra>
// kernel: _fadein_jit.1
= control target key start
LH: loop header
LB: loop body
LE: loop exit
PB: predicated region body
PF: predicated region fallthrough
CT: control target
= control target key end

     0   :  { %s79_s0 = inlined_call_operand.<no memory space> [shape: f32[1], index: 0, kind: input, shape index: {}]   ;;  %s80_s1 = inlined_call_operand.vmem [shape: f32[2,1024], index: 1, kind: input, shape index: {}]   ;;  %s81_s2 = inlined_call_operand.vmem [shape: f32[2,1024], index: 2, kind: input, shape index: {}]   ;;  %s82_s3 = inlined_call_operand.vmem [shape: f32[2,1024], index: 3, kind: output, shape index: {}]  }
   0x1   :  { %v16_v0 = vld [vmem:[%s80_s1] sm:$0xff]  ;;  %s20_s18 = ssub.f32 1.0, %s79_s0  ;;  %v24_v2 = vstv %s79_s0  ;;  %v17_v3 = vld [vmem:[%s80_s1 + $0x8] sm:$0xff] }
   0x2   :  { %v18_v1 = vld [vmem:[%s81_s2] sm:$0xff]  ;;  %v19_v5 = vld [vmem:[%s81_s2 + $0x8] sm:$0xff] }
   0x3   :  { %v25_v4 = vmul.f32 %v24_v2, %v18_v1  ;;  %v21_v6 = vstv %s20_s18  ;;  %v26_v7 = vmul.f32 %v24_v2, %v19_v5 }
   0x4   :  { %v22_v8 = vmul.f32 %v21_v6, %v16_v0  ;;  %v23_v9 = vmul.f32 %v21_v6, %v17_v3 }
   0x6   :  { %v27_v10 = vadd.f32 %v25_v4, %v22_v8  ;;  %v28_v11 = vadd.f32 %v26_v7, %v23_v9 }
   0x8   :  { %29 = vst [vmem:[%s82_s3] sm:$0xff] %v27_v10  ;;  %30 = vst [vmem:[%s82_s3 + $0x8] sm:$0xff] %v28_v11 }

</bundles_post_ra>
